<compile_context>
chip_gen: v7x
topology: tpu7x:2x2x1
jax: 0.10.0
libtpu: 0.0.40
codegen_flags: <defaults>
</compile_context>

<pallas_src>
import jax
import jax.numpy as jnp
from jax.experimental import pallas as pl
from jax.experimental.pallas import tpu as pltpu


# ----------------------------- fused autoencoder kernel -----------------------------

def autoencoder_kernel(x_ref,
                       w1_ref, b1_ref, w2_ref, b2_ref, w3_ref, b3_ref,
                       w34_ref, b34_ref, w5_ref, b5_ref, w6_ref, b6_ref,
                       xrec_ref, z_ref):
    bf16 = jnp.bfloat16
    x = x_ref[...].astype(bf16)                                   # (TB, pad_in)

    # ---- encoder: Linear(in,512) -> ReLU -> Linear(512,128) -> ReLU -> Linear(128,latent)
    h = jnp.dot(x, w1_ref[...], preferred_element_type=jnp.float32) + b1_ref[...]
    h = jnp.maximum(h, 0.0).astype(bf16)                          # (TB, 512)
    h = jnp.dot(h, w2_ref[...], preferred_element_type=jnp.float32) + b2_ref[...]
    h2 = jnp.maximum(h, 0.0)                                      # (TB, 128) f32
    h2b = h2.astype(bf16)

    z = jnp.dot(h2b, w3_ref[...], preferred_element_type=jnp.float32) + b3_ref[...]
    z_ref[...] = z.astype(z_ref.dtype)                            # (TB, pad_lat)

    # ---- decoder.  First decoder Linear is fused with the last encoder Linear:
    #      relu(z @ w4 + b4) == relu(h2 @ (w3 @ w4) + (b3 @ w4 + b4))
    h = jnp.dot(h2b, w34_ref[...], preferred_element_type=jnp.float32) + b34_ref[...]
    h = jnp.maximum(h, 0.0).astype(bf16)                          # (TB, 128)
    h = jnp.dot(h, w5_ref[...], preferred_element_type=jnp.float32) + b5_ref[...]
    h = jnp.maximum(h, 0.0).astype(bf16)                          # (TB, 512)
    xrec = jnp.dot(h, w6_ref[...], preferred_element_type=jnp.float32) + b6_ref[...]
    xrec_ref[...] = xrec.astype(xrec_ref.dtype)                   # (TB, pad_in)


# ----------------------------- one-time parameter preparation -----------------------------

def _round_up(x, m):
    return m * (-(-x // m))


def prepare_params(params):
    """One-time layout plumbing (hoisted out of the forward path):
    (out,in) -> (in,out) transposes, zero-pad feature dims to lane multiples of 128,
    bf16 casts of matmul weights (biases stay f32), and the layer-3/4 fusion."""
    f32, bf16 = jnp.float32, jnp.bfloat16
    input_dim = params["w1"].shape[1]
    latent_dim = params["w3"].shape[0]
    pad_in = _round_up(input_dim, 128)
    pad_lat = _round_up(latent_dim, 128)

    w1 = params["w1"].T.astype(f32)                                  # (in, 512)
    w1 = jnp.pad(w1, ((0, pad_in - input_dim), (0, 0))).astype(bf16)
    b1 = params["b1"].reshape(1, -1).astype(f32)

    w2 = params["w2"].T.astype(bf16)                                 # (512, 128)
    b2 = params["b2"].reshape(1, -1).astype(f32)

    w3 = params["w3"].T.astype(f32)                                  # (128, latent)
    w3p = jnp.pad(w3, ((0, 0), (0, pad_lat - latent_dim))).astype(bf16)
    b3p = jnp.pad(params["b3"], (0, pad_lat - latent_dim)).reshape(1, -1).astype(f32)

    w4 = params["w4"].T.astype(f32)                                  # (latent, 128)
    w34 = (w3 @ w4).astype(bf16)                                     # (128, 128) fused
    b34 = (params["b3"] @ w4 + params["b4"]).reshape(1, -1).astype(f32)

    w5 = params["w5"].T.astype(bf16)                                 # (128, 512)
    b5 = params["b5"].reshape(1, -1).astype(f32)

    w6 = params["w6"].T.astype(f32)                                  # (512, in)
    w6 = jnp.pad(w6, ((0, 0), (0, pad_in - input_dim))).astype(bf16)
    b6 = jnp.pad(params["b6"], (0, pad_in - input_dim)).reshape(1, -1).astype(f32)

    weights = [w1, b1, w2, b2, w3p, b3p, w34, b34, w5, b5, w6, b6]
    return dict(weights=weights, input_dim=input_dim, latent_dim=latent_dim,
                pad_in=pad_in, pad_lat=pad_lat)


# ----------------------------- forward wrapper -----------------------------

def _choose_batch_tile(b_rows, max_batch_tile):
    """b_rows is sublane-aligned (multiple of 8). Prefer big tiles; if the whole
    batch would be one large tile, split it in two so ("parallel",) can shard
    across v7x's two TensorCores."""
    if 512 <= b_rows <= max_batch_tile:
        n_tiles = 2
    else:
        n_tiles = -(-b_rows // max_batch_tile)
    return _round_up(-(-b_rows // n_tiles), 8)


def horse_autoencoder_forward(x, prepared, *, max_batch_tile=512):
    """x: (B, input_dim) f32. prepared: output of prepare_params(params).
    Returns (x_recon, z), matching HorseFeatureAutoEncoder.forward (eval semantics)."""
    B, input_dim = x.shape
    assert input_dim == prepared["input_dim"]
    latent_dim = prepared["latent_dim"]
    pad_in, pad_lat = prepared["pad_in"], prepared["pad_lat"]
    weights = prepared["weights"]

    b_rows = _round_up(B, 8)
    tb = _choose_batch_tile(b_rows, max_batch_tile)
    n_tiles = -(-b_rows // tb)
    b_pad = n_tiles * tb

    # Lane/sublane pad of x (feature 100->128, batch to tile multiple).
    if (b_pad, pad_in) != (B, input_dim):
        x = jnp.pad(x, ((0, b_pad - B), (0, pad_in - input_dim)))

    matmul_dims = [(pad_in, 512), (512, 128), (128, pad_lat),
                   (128, 128), (128, 512), (512, pad_in)]
    cost = pl.CostEstimate(
        flops=2 * b_pad * sum(k * n for k, n in matmul_dims),
        transcendentals=0,
        bytes_accessed=int(x.size) * 4 + b_pad * (pad_in + pad_lat) * 4
                       + sum(int(a.size) * a.dtype.itemsize for a in weights))

    def const_spec(a):
        # Constant index_map: fetched once, VMEM-resident across all batch tiles.
        return pl.BlockSpec(a.shape, lambda i: (0, 0))

    x_recon, z = pl.pallas_call(
        autoencoder_kernel,
        out_shape=(jax.ShapeDtypeStruct((b_pad, pad_in), jnp.float32),
                   jax.ShapeDtypeStruct((b_pad, pad_lat), jnp.float32)),
        grid=(n_tiles,),
        in_specs=[pl.BlockSpec((tb, pad_in), lambda i: (i, 0))]
                 + [const_spec(a) for a in weights],
        out_specs=(pl.BlockSpec((tb, pad_in), lambda i: (i, 0)),
                   pl.BlockSpec((tb, pad_lat), lambda i: (i, 0))),
        compiler_params=pltpu.CompilerParams(dimension_semantics=("parallel",)),
        cost_estimate=cost,
    )(x, *weights)

    return x_recon[:B, :input_dim], z[:B, :latent_dim]


# ----------------------------- params & pure-JAX reference -----------------------------

def init_params(key, input_dim, latent_dim=50):
    dims = [(512, input_dim), (128, 512), (latent_dim, 128),
            (128, latent_dim), (512, 128), (input_dim, 512)]
    keys = jax.random.split(key, 2 * len(dims))
    params = {}
    for i, (out_d, in_d) in enumerate(dims):
        bound = 1.0 / (in_d ** 0.5)                       # nn.Linear default init range
        params[f"w{i+1}"] = jax.random.uniform(keys[2 * i], (out_d, in_d),
                                               jnp.float32, -bound, bound)
        params[f"b{i+1}"] = jax.random.uniform(keys[2 * i + 1], (out_d,),
                                               jnp.float32, -bound, bound)
    return params


def reference_forward(x, params):
    h = jnp.maximum(x @ params["w1"].T + params["b1"], 0.0)
    h = jnp.maximum(h @ params["w2"].T + params["b2"], 0.0)
    z = h @ params["w3"].T + params["b3"]
    h = jnp.maximum(z @ params["w4"].T + params["b4"], 0.0)
    h = jnp.maximum(h @ params["w5"].T + params["b5"], 0.0)
    x_recon = h @ params["w6"].T + params["b6"]
    return x_recon, z


# ----------------------------- main -----------------------------

if __name__ == "__main__":
    input_dim = 100
    latent_dim = 50
    B = 16

    key = jax.random.PRNGKey(0)
    k_x, k_p = jax.random.split(key)
    x = jax.random.normal(k_x, (B, input_dim), jnp.float32)
    params = init_params(k_p, input_dim, latent_dim)

    prepared = prepare_params(params)                 # one-time, outside forward path

    x_recon, z = horse_autoencoder_forward(x, prepared)
    x_recon = jax.block_until_ready(x_recon)
    z = jax.block_until_ready(z)

    assert x_recon.shape == (B, input_dim) and x_recon.dtype == jnp.float32
    assert z.shape == (B, latent_dim) and z.dtype == jnp.float32

    # sanity check against a pure-f32 JAX reference (bf16 matmul operands => looser tol)
    xr_ref, z_ref = reference_forward(x, params)
    assert jnp.max(jnp.abs(x_recon - xr_ref)) < 5e-2
    assert jnp.max(jnp.abs(z - z_ref)) < 5e-2

    print("KERNEL_OK")
</pallas_src>

<mosaic_0001>
module attributes {stable_mosaic.version = 11 : i64} {
  func.func @autoencoder_kernel(%arg0: i32, %arg1: memref<16x128xf32, #tpu.memory_space<vmem>>, %arg2: memref<128x512xbf16, #tpu.memory_space<vmem>>, %arg3: memref<1x512xf32, #tpu.memory_space<vmem>>, %arg4: memref<512x128xbf16, #tpu.memory_space<vmem>>, %arg5: memref<1x128xf32, #tpu.memory_space<vmem>>, %arg6: memref<128x128xbf16, #tpu.memory_space<vmem>>, %arg7: memref<1x128xf32, #tpu.memory_space<vmem>>, %arg8: memref<128x128xbf16, #tpu.memory_space<vmem>>, %arg9: memref<1x128xf32, #tpu.memory_space<vmem>>, %arg10: memref<128x512xbf16, #tpu.memory_space<vmem>>, %arg11: memref<1x512xf32, #tpu.memory_space<vmem>>, %arg12: memref<512x128xbf16, #tpu.memory_space<vmem>>, %arg13: memref<1x128xf32, #tpu.memory_space<vmem>>, %arg14: memref<16x128xf32, #tpu.memory_space<vmem>>, %arg15: memref<16x128xf32, #tpu.memory_space<vmem>>) attributes {dimension_semantics = [#tpu.dimension_semantics<parallel>], iteration_bounds = array<i64: 1>, scalar_prefetch = 0 : i64, scratch_operands = 0 : i64, tpu.core_type = #tpu.core_type<tc>, window_params = [{transform_indices = @transform_0, window_bounds = array<i64: 16, 128>}, {pipeline_mode = #tpu.pipeline_mode<synchronous>, transform_indices = @transform_1, window_bounds = array<i64: 128, 512>}, {pipeline_mode = #tpu.pipeline_mode<synchronous>, transform_indices = @transform_2, window_bounds = array<i64: 1, 512>}, {pipeline_mode = #tpu.pipeline_mode<synchronous>, transform_indices = @transform_3, window_bounds = array<i64: 512, 128>}, {pipeline_mode = #tpu.pipeline_mode<synchronous>, transform_indices = @transform_4, window_bounds = array<i64: 1, 128>}, {pipeline_mode = #tpu.pipeline_mode<synchronous>, transform_indices = @transform_5, window_bounds = array<i64: 128, 128>}, {pipeline_mode = #tpu.pipeline_mode<synchronous>, transform_indices = @transform_6, window_bounds = array<i64: 1, 128>}, {pipeline_mode = #tpu.pipeline_mode<synchronous>, transform_indices = @transform_7, window_bounds = array<i64: 128, 128>}, {pipeline_mode = #tpu.pipeline_mode<synchronous>, transform_indices = @transform_8, window_bounds = array<i64: 1, 128>}, {pipeline_mode = #tpu.pipeline_mode<synchronous>, transform_indices = @transform_9, window_bounds = array<i64: 128, 512>}, {pipeline_mode = #tpu.pipeline_mode<synchronous>, transform_indices = @transform_10, window_bounds = array<i64: 1, 512>}, {pipeline_mode = #tpu.pipeline_mode<synchronous>, transform_indices = @transform_11, window_bounds = array<i64: 512, 128>}, {pipeline_mode = #tpu.pipeline_mode<synchronous>, transform_indices = @transform_12, window_bounds = array<i64: 1, 128>}, {transform_indices = @transform_13, window_bounds = array<i64: 16, 128>}, {transform_indices = @transform_14, window_bounds = array<i64: 16, 128>}]} {
    %c0 = arith.constant 0 : index
    %c0_0 = arith.constant 0 : index
    %0 = vector.load %arg1[%c0, %c0_0] : memref<16x128xf32, #tpu.memory_space<vmem>>, vector<16x128xf32>
    %1 = arith.truncf %0 : vector<16x128xf32> to vector<16x128xbf16>
    %c0_1 = arith.constant 0 : index
    %c0_2 = arith.constant 0 : index
    %2 = vector.load %arg2[%c0_1, %c0_2] : memref<128x512xbf16, #tpu.memory_space<vmem>>, vector<128x512xbf16>
    %cst = arith.constant dense<0.000000e+00> : vector<16x512xf32>
    %3 = tpu.matmul %1, %2, %cst {dimension_numbers = #tpu.dot_dimension_numbers<[1], [0], [0], [1], [0, 0, 1, 1], [], []>} : vector<16x128xbf16>, vector<128x512xbf16>, vector<16x512xf32> -> vector<16x512xf32>
    %c0_3 = arith.constant 0 : index
    %c0_4 = arith.constant 0 : index
    %4 = vector.load %arg3[%c0_3, %c0_4] : memref<1x512xf32, #tpu.memory_space<vmem>>, vector<1x512xf32>
    %5 = vector.broadcast %4 : vector<1x512xf32> to vector<16x512xf32>
    %6 = arith.addf %3, %5 : vector<16x512xf32>
    %cst_5 = arith.constant 0.000000e+00 : f32
    %7 = vector.broadcast %cst_5 : f32 to vector<16x512xf32>
    %8 = arith.maximumf %6, %7 : vector<16x512xf32>
    %9 = arith.truncf %8 : vector<16x512xf32> to vector<16x512xbf16>
    %c0_6 = arith.constant 0 : index
    %c0_7 = arith.constant 0 : index
    %10 = vector.load %arg4[%c0_6, %c0_7] : memref<512x128xbf16, #tpu.memory_space<vmem>>, vector<512x128xbf16>
    %cst_8 = arith.constant dense<0.000000e+00> : vector<16x128xf32>
    %11 = tpu.matmul %9, %10, %cst_8 {dimension_numbers = #tpu.dot_dimension_numbers<[1], [0], [0], [1], [0, 0, 1, 1], [], []>} : vector<16x512xbf16>, vector<512x128xbf16>, vector<16x128xf32> -> vector<16x128xf32>
    %c0_9 = arith.constant 0 : index
    %c0_10 = arith.constant 0 : index
    %12 = vector.load %arg5[%c0_9, %c0_10] : memref<1x128xf32, #tpu.memory_space<vmem>>, vector<1x128xf32>
    %13 = vector.broadcast %12 : vector<1x128xf32> to vector<16x128xf32>
    %14 = arith.addf %11, %13 : vector<16x128xf32>
    %cst_11 = arith.constant 0.000000e+00 : f32
    %15 = vector.broadcast %cst_11 : f32 to vector<16x128xf32>
    %16 = arith.maximumf %14, %15 : vector<16x128xf32>
    %17 = arith.truncf %16 : vector<16x128xf32> to vector<16x128xbf16>
    %c0_12 = arith.constant 0 : index
    %c0_13 = arith.constant 0 : index
    %18 = vector.load %arg6[%c0_12, %c0_13] : memref<128x128xbf16, #tpu.memory_space<vmem>>, vector<128x128xbf16>
    %cst_14 = arith.constant dense<0.000000e+00> : vector<16x128xf32>
    %19 = tpu.matmul %17, %18, %cst_14 {dimension_numbers = #tpu.dot_dimension_numbers<[1], [0], [0], [1], [0, 0, 1, 1], [], []>} : vector<16x128xbf16>, vector<128x128xbf16>, vector<16x128xf32> -> vector<16x128xf32>
    %c0_15 = arith.constant 0 : index
    %c0_16 = arith.constant 0 : index
    %20 = vector.load %arg7[%c0_15, %c0_16] : memref<1x128xf32, #tpu.memory_space<vmem>>, vector<1x128xf32>
    %21 = vector.broadcast %20 : vector<1x128xf32> to vector<16x128xf32>
    %22 = arith.addf %19, %21 : vector<16x128xf32>
    %c0_17 = arith.constant 0 : index
    %c0_18 = arith.constant 0 : index
    %23 = vector.load %arg15[%c0_17, %c0_18] : memref<16x128xf32, #tpu.memory_space<vmem>>, vector<16x128xf32>
    tpu.vector_store %arg15[%c0_17, %c0_18], %22 {strides = array<i32>} : memref<16x128xf32, #tpu.memory_space<vmem>>, vector<16x128xf32>,
    %c0_19 = arith.constant 0 : index
    %c0_20 = arith.constant 0 : index
    %24 = vector.load %arg8[%c0_19, %c0_20] : memref<128x128xbf16, #tpu.memory_space<vmem>>, vector<128x128xbf16>
    %cst_21 = arith.constant dense<0.000000e+00> : vector<16x128xf32>
    %25 = tpu.matmul %17, %24, %cst_21 {dimension_numbers = #tpu.dot_dimension_numbers<[1], [0], [0], [1], [0, 0, 1, 1], [], []>} : vector<16x128xbf16>, vector<128x128xbf16>, vector<16x128xf32> -> vector<16x128xf32>
    %c0_22 = arith.constant 0 : index
    %c0_23 = arith.constant 0 : index
    %26 = vector.load %arg9[%c0_22, %c0_23] : memref<1x128xf32, #tpu.memory_space<vmem>>, vector<1x128xf32>
    %27 = vector.broadcast %26 : vector<1x128xf32> to vector<16x128xf32>
    %28 = arith.addf %25, %27 : vector<16x128xf32>
    %cst_24 = arith.constant 0.000000e+00 : f32
    %29 = vector.broadcast %cst_24 : f32 to vector<16x128xf32>
    %30 = arith.maximumf %28, %29 : vector<16x128xf32>
    %31 = arith.truncf %30 : vector<16x128xf32> to vector<16x128xbf16>
    %c0_25 = arith.constant 0 : index
    %c0_26 = arith.constant 0 : index
    %32 = vector.load %arg10[%c0_25, %c0_26] : memref<128x512xbf16, #tpu.memory_space<vmem>>, vector<128x512xbf16>
    %cst_27 = arith.constant dense<0.000000e+00> : vector<16x512xf32>
    %33 = tpu.matmul %31, %32, %cst_27 {dimension_numbers = #tpu.dot_dimension_numbers<[1], [0], [0], [1], [0, 0, 1, 1], [], []>} : vector<16x128xbf16>, vector<128x512xbf16>, vector<16x512xf32> -> vector<16x512xf32>
    %c0_28 = arith.constant 0 : index
    %c0_29 = arith.constant 0 : index
    %34 = vector.load %arg11[%c0_28, %c0_29] : memref<1x512xf32, #tpu.memory_space<vmem>>, vector<1x512xf32>
    %35 = vector.broadcast %34 : vector<1x512xf32> to vector<16x512xf32>
    %36 = arith.addf %33, %35 : vector<16x512xf32>
    %cst_30 = arith.constant 0.000000e+00 : f32
    %37 = vector.broadcast %cst_30 : f32 to vector<16x512xf32>
    %38 = arith.maximumf %36, %37 : vector<16x512xf32>
    %39 = arith.truncf %38 : vector<16x512xf32> to vector<16x512xbf16>
    %c0_31 = arith.constant 0 : index
    %c0_32 = arith.constant 0 : index
    %40 = vector.load %arg12[%c0_31, %c0_32] : memref<512x128xbf16, #tpu.memory_space<vmem>>, vector<512x128xbf16>
    %cst_33 = arith.constant dense<0.000000e+00> : vector<16x128xf32>
    %41 = tpu.matmul %39, %40, %cst_33 {dimension_numbers = #tpu.dot_dimension_numbers<[1], [0], [0], [1], [0, 0, 1, 1], [], []>} : vector<16x512xbf16>, vector<512x128xbf16>, vector<16x128xf32> -> vector<16x128xf32>
    %c0_34 = arith.constant 0 : index
    %c0_35 = arith.constant 0 : index
    %42 = vector.load %arg13[%c0_34, %c0_35] : memref<1x128xf32, #tpu.memory_space<vmem>>, vector<1x128xf32>
    %43 = vector.broadcast %42 : vector<1x128xf32> to vector<16x128xf32>
    %44 = arith.addf %41, %43 : vector<16x128xf32>
    %c0_36 = arith.constant 0 : index
    %c0_37 = arith.constant 0 : index
    %45 = vector.load %arg14[%c0_36, %c0_37] : memref<16x128xf32, #tpu.memory_space<vmem>>, vector<16x128xf32>
    tpu.vector_store %arg14[%c0_36, %c0_37], %44 {strides = array<i32>} : memref<16x128xf32, #tpu.memory_space<vmem>>, vector<16x128xf32>,
    return
  }
  func.func @transform_0(%arg0: i32) -> (i32, i32) {
    %c0_i32 = arith.constant 0 : i32
    %c0_i32_0 = arith.constant 0 : i32
    return %arg0, %c0_i32 : i32, i32
  }
  func.func @transform_1(%arg0: i32) -> (i32, i32) {
    %c0_i32 = arith.constant 0 : i32
    %c0_i32_0 = arith.constant 0 : i32
    %c0_i32_1 = arith.constant 0 : i32
    return %c0_i32, %c0_i32_0 : i32, i32
  }
  func.func @transform_2(%arg0: i32) -> (i32, i32) {
    %c0_i32 = arith.constant 0 : i32
    %c0_i32_0 = arith.constant 0 : i32
    %c0_i32_1 = arith.constant 0 : i32
    return %c0_i32, %c0_i32_0 : i32, i32
  }
  func.func @transform_3(%arg0: i32) -> (i32, i32) {
    %c0_i32 = arith.constant 0 : i32
    %c0_i32_0 = arith.constant 0 : i32
    %c0_i32_1 = arith.constant 0 : i32
    return %c0_i32, %c0_i32_0 : i32, i32
  }
  func.func @transform_4(%arg0: i32) -> (i32, i32) {
    %c0_i32 = arith.constant 0 : i32
    %c0_i32_0 = arith.constant 0 : i32
    %c0_i32_1 = arith.constant 0 : i32
    return %c0_i32, %c0_i32_0 : i32, i32
  }
  func.func @transform_5(%arg0: i32) -> (i32, i32) {
    %c0_i32 = arith.constant 0 : i32
    %c0_i32_0 = arith.constant 0 : i32
    %c0_i32_1 = arith.constant 0 : i32
    return %c0_i32, %c0_i32_0 : i32, i32
  }
  func.func @transform_6(%arg0: i32) -> (i32, i32) {
    %c0_i32 = arith.constant 0 : i32
    %c0_i32_0 = arith.constant 0 : i32
    %c0_i32_1 = arith.constant 0 : i32
    return %c0_i32, %c0_i32_0 : i32, i32
  }
  func.func @transform_7(%arg0: i32) -> (i32, i32) {
    %c0_i32 = arith.constant 0 : i32
    %c0_i32_0 = arith.constant 0 : i32
    %c0_i32_1 = arith.constant 0 : i32
    return %c0_i32, %c0_i32_0 : i32, i32
  }
  func.func @transform_8(%arg0: i32) -> (i32, i32) {
    %c0_i32 = arith.constant 0 : i32
    %c0_i32_0 = arith.constant 0 : i32
    %c0_i32_1 = arith.constant 0 : i32
    return %c0_i32, %c0_i32_0 : i32, i32
  }
  func.func @transform_9(%arg0: i32) -> (i32, i32) {
    %c0_i32 = arith.constant 0 : i32
    %c0_i32_0 = arith.constant 0 : i32
    %c0_i32_1 = arith.constant 0 : i32
    return %c0_i32, %c0_i32_0 : i32, i32
  }
  func.func @transform_10(%arg0: i32) -> (i32, i32) {
    %c0_i32 = arith.constant 0 : i32
    %c0_i32_0 = arith.constant 0 : i32
    %c0_i32_1 = arith.constant 0 : i32
    return %c0_i32, %c0_i32_0 : i32, i32
  }
  func.func @transform_11(%arg0: i32) -> (i32, i32) {
    %c0_i32 = arith.constant 0 : i32
    %c0_i32_0 = arith.constant 0 : i32
    %c0_i32_1 = arith.constant 0 : i32
    return %c0_i32, %c0_i32_0 : i32, i32
  }
  func.func @transform_12(%arg0: i32) -> (i32, i32) {
    %c0_i32 = arith.constant 0 : i32
    %c0_i32_0 = arith.constant 0 : i32
    %c0_i32_1 = arith.constant 0 : i32
    return %c0_i32, %c0_i32_0 : i32, i32
  }
  func.func @transform_13(%arg0: i32) -> (i32, i32) {
    %c0_i32 = arith.constant 0 : i32
    %c0_i32_0 = arith.constant 0 : i32
    return %arg0, %c0_i32 : i32, i32
  }
  func.func @transform_14(%arg0: i32) -> (i32, i32) {
    %c0_i32 = arith.constant 0 : i32
    %c0_i32_0 = arith.constant 0 : i32
    return %arg0, %c0_i32 : i32, i32
  }
}

</mosaic_0001>

<bundles_post_ra>
// kernel: tpu_custom_call.1
= control target key start
LH: loop header
LB: loop body
LE: loop exit
PB: predicated region body
PF: predicated region fallthrough
CT: control target
= control target key end

     0   :  { %20 = vsyncpa [#allocation3], 0  ;;  %s2726_s0 = inlined_call_operand.hbm [shape: f32[16,128], index: 0, kind: input, shape index: {}]   ;;  %s2727_s1 = inlined_call_operand.hbm [shape: bf16[128,512], index: 1, kind: input, shape index: {}]   ;;  %s2728_s2 = inlined_call_operand.vmem [shape: f32[1,512], index: 2, kind: input, shape index: {}]   ;;  %s2729_s3 = inlined_call_operand.hbm [shape: bf16[512,128], index: 3, kind: input, shape index: {}]   ;;  %s2730_s4 = inlined_call_operand.vmem [shape: f32[1,128], index: 4, kind: input, shape index: {}]   ;;  %s2731_s5 = inlined_call_operand.hbm [shape: bf16[128,128], index: 5, kind: input, shape index: {}]   ;;  %s2732_s6 = inlined_call_operand.vmem [shape: f32[1,128], index: 6, kind: input, shape index: {}]   ;;  %s2733_s7 = inlined_call_operand.hbm [shape: bf16[128,128], index: 7, kind: input, shape index: {}]   ;;  %s2734_s8 = inlined_call_operand.vmem [shape: f32[1,128], index: 8, kind: input, shape index: {}]   ;;  %s2735_s9 = inlined_call_operand.hbm [shape: bf16[128,512], index: 9, kind: input, shape index: {}]   ;;  %s2736_s10 = inlined_call_operand.vmem [shape: f32[1,512], index: 10, kind: input, shape index: {}]   ;;  %s2737_s11 = inlined_call_operand.hbm [shape: bf16[512,128], index: 11, kind: input, shape index: {}]   ;;  %s2738_s12 = inlined_call_operand.vmem [shape: f32[1,128], index: 12, kind: input, shape index: {}]   ;;  %s2739_s13 = inlined_call_operand.hbm [shape: f32[16,128], index: 13, kind: output, shape index: {0}]   ;;  %s2740_s14 = inlined_call_operand.hbm [shape: f32[16,128], index: 14, kind: output, shape index: {1}]  }
   0x1   :  { %21 = vsyncpa [#allocation6], 0 }
   0x2   :  { %22 = vsyncpa [#allocation9], 0 }
   0x3   :  { %23 = vsyncpa [#allocation12], 0 }
   0x4   :  { %24 = vsyncpa [#allocation4], 0 }
   0x5   :  { %25 = vsyncpa [#allocation16], 0  ;;  %s2429_s29 = smov [#allocation5]   ;;  %s2219_s17 = scalar_lea.hbm %s2727_s1, 4096 }
   0x6   :  { %s43_s30 = sshll.u32 %s2429_s29, 4  ;;  %p2220_p0 = scmp.ne.s32.totalorder %s2727_s1, %s2219_s17  ;;  %s44_s30 = int_to_ptr.vmem [resolvable:$true] %s43_s30 }
   0x7   :  { %p2223_p1 = scmp.lt.u32.totalorder %s2219_s17, %s2727_s1 }
   0x9   :  { %p2225_p2 = pnand %p2223_p1, %p2220_p0 }
   0xb   :  { %2228 = shalt.err (!%p2225_p2)
}
   0xc   :  { %s2229_s22 = scalar_lea.vmem %s44_s30, 4096  ;;  %p2234_p4 = scmp.lt.s32.totalorder %s44_s30, %s44_s30 }
   0xd   :  { %p2230_p3 = scmp.ne.s32.totalorder %s44_s30, %s2229_s22  ;;  %p2235_p5 = scmp.lt.s32.totalorder %s2229_s22, %s2229_s22 }
   0xf   :  { %p2236_p6 = por %p2235_p5, %p2234_p4 }
  0x11   :  { %p2237_p7 = pnand %p2236_p6, %p2230_p3 }
  0x13   :  { %2240 = shalt.err (!%p2237_p7)
}
  0x14   :  { %s2430_s23 = smov 256   ;;  %s2431_s24 = smov 16  }
  0x15   :  { %49 = dma.hbm_to_vmem [thread:$0]  %s2727_s1, 4096, %s44_s30, [#allocation6], %s2430_s23, %s2430_s23, %s2431_s24  }
  0x16   :  { %s2432_s27 = smov [#allocation8]   ;;  %s2433_s29 = smov [#allocation11]  }
  0x17   :  { %s71_s28 = sshll.u32 %s2432_s27, 4  ;;  %s99_s15 = sshll.u32 %s2433_s29, 4  ;;  %s72_s28 = int_to_ptr.vmem [resolvable:$true] %s71_s28  ;;  %s100_s15 = int_to_ptr.vmem [resolvable:$true] %s99_s15 }
  0x18   :  { %s2241_s18 = scalar_lea.hbm %s2731_s5, 1024 }
  0x19   :  { %p2242_p8 = scmp.ne.s32.totalorder %s2731_s5, %s2241_s18  ;;  %p2245_p9 = scmp.lt.u32.totalorder %s2241_s18, %s2731_s5 }
  0x1b   :  { %p2247_p10 = pnand %p2245_p9, %p2242_p8 }
  0x1d   :  { %2250 = shalt.err (!%p2247_p10)
}
  0x1e   :  { %s2251_s1 = scalar_lea.vmem %s72_s28, 1024  ;;  %p2256_p12 = scmp.lt.s32.totalorder %s72_s28, %s72_s28 }
  0x1f   :  { %p2252_p11 = scmp.ne.s32.totalorder %s72_s28, %s2251_s1  ;;  %p2257_p13 = scmp.lt.s32.totalorder %s2251_s1, %s2251_s1 }
  0x21   :  { %p2258_p0 = por %p2257_p13, %p2256_p12 }
  0x23   :  { %p2259_p1 = pnand %p2258_p0, %p2252_p11 }
  0x25   :  { %2262 = shalt.err (!%p2259_p1)
}
  0x26   :  { %s2434_s30 = smov 64   ;;  %s2435_s25 = smov 4  }
  0x27   :  { %77 = dma.hbm_to_vmem [thread:$0]  %s2731_s5, 1024, %s72_s28, [#allocation9], %s2434_s30, %s2434_s30, %s2435_s25  }
  0x28   :  { %s2263_s17 = scalar_lea.hbm %s2735_s9, 4096 }
  0x29   :  { %p2264_p2 = scmp.ne.s32.totalorder %s2735_s9, %s2263_s17  ;;  %p2267_p3 = scmp.lt.u32.totalorder %s2263_s17, %s2735_s9 }
  0x2b   :  { %p2269_p4 = pnand %p2267_p3, %p2264_p2 }
  0x2d   :  { %2272 = shalt.err (!%p2269_p4)
}
  0x2e   :  { %s2273_s22 = scalar_lea.vmem %s100_s15, 4096  ;;  %p2278_p6 = scmp.lt.s32.totalorder %s100_s15, %s100_s15 }
  0x2f   :  { %p2274_p5 = scmp.ne.s32.totalorder %s100_s15, %s2273_s22  ;;  %p2279_p7 = scmp.lt.s32.totalorder %s2273_s22, %s2273_s22 }
  0x31   :  { %p2280_p8 = por %p2279_p7, %p2278_p6 }
  0x33   :  { %p2281_p9 = pnand %p2280_p8, %p2274_p5 }
  0x35   :  { %2284 = shalt.err (!%p2281_p9)
}
  0x36   :  { %105 = dma.hbm_to_vmem [thread:$0]  %s2735_s9, 4096, %s100_s15, [#allocation12], %s2430_s23, %s2430_s23, %s2431_s24  }
  0x37   :  { %s2436_s1 = smov [#allocation2]   ;;  %s2285_s16 = scalar_lea.hbm %s2726_s0, 256 }
  0x38   :  { %s31_s26 = sshll.u32 %s2436_s1, 4  ;;  %p2286_p10 = scmp.ne.s32.totalorder %s2726_s0, %s2285_s16  ;;  %s32_s26 = int_to_ptr.vmem [resolvable:$true] %s31_s26 }
  0x39   :  { %p2289_p11 = scmp.lt.u32.totalorder %s2285_s16, %s2726_s0 }
  0x3b   :  { %p2291_p12 = pnand %p2289_p11, %p2286_p10 }
  0x3d   :  { %2294 = shalt.err (!%p2291_p12)
}
  0x3e   :  { %s2295_s21 = scalar_lea.vmem %s32_s26, 256  ;;  %p2300_p0 = scmp.lt.s32.totalorder %s32_s26, %s32_s26 }
  0x3f   :  { %p2296_p13 = scmp.ne.s32.totalorder %s32_s26, %s2295_s21  ;;  %p2301_p1 = scmp.lt.s32.totalorder %s2295_s21, %s2295_s21 }
  0x41   :  { %p2302_p2 = por %p2301_p1, %p2300_p0 }
  0x43   :  { %p2303_p3 = pnand %p2302_p2, %p2296_p13 }
  0x45   :  { %2306 = shalt.err (!%p2303_p3)
}
  0x46   :  { %s2437_s9 = smov 128   ;;  %s2438_s23 = smov 8  }
  0x47   :  { %37 = dma.hbm_to_vmem [thread:$0]  %s2726_s0, 256, %s32_s26, [#allocation3], %s2437_s9, %s2437_s9, %s2438_s23  }
  0x48   :  { %s2439_s22 = smov [#allocation7]   ;;  %s2440_s28 = smov [#allocation10]  }
  0x49   :  { %s57_s5 = sshll.u32 %s2439_s22, 4  ;;  %s85_s1 = sshll.u32 %s2440_s28, 4  ;;  %s58_s5 = int_to_ptr.vmem [resolvable:$true] %s57_s5  ;;  %s2582_s1 = int_to_ptr.vmem [resolvable:$true] %s85_s1 }
  0x4a   :  { %s2307_s16 = scalar_lea.hbm %s2729_s3, 4096 }
  0x4b   :  { %p2308_p4 = scmp.ne.s32.totalorder %s2729_s3, %s2307_s16  ;;  %p2311_p5 = scmp.lt.u32.totalorder %s2307_s16, %s2729_s3 }
  0x4d   :  { %p2313_p6 = pnand %p2311_p5, %p2308_p4 }
  0x4f   :  { %2316 = shalt.err (!%p2313_p6)
}
  0x50   :  { %s2317_s0 = scalar_lea.vmem %s58_s5, 4096  ;;  %p2322_p8 = scmp.lt.s32.totalorder %s58_s5, %s58_s5 }
  0x51   :  { %p2318_p7 = scmp.ne.s32.totalorder %s58_s5, %s2317_s0  ;;  %p2323_p9 = scmp.lt.s32.totalorder %s2317_s0, %s2317_s0 }
  0x53   :  { %p2324_p10 = por %p2323_p9, %p2322_p8 }
  0x55   :  { %p2325_p11 = pnand %p2324_p10, %p2318_p7 }
  0x57   :  { %2328 = shalt.err (!%p2325_p11)
}
  0x58   :  { %63 = dma.hbm_to_vmem [thread:$0]  %s2729_s3, 4096, %s58_s5, [#allocation6], %s2434_s30, %s2434_s30, %s2435_s25  }
  0x59   :  { %s2329_s22 = scalar_lea.hbm %s2733_s7, 1024 }
  0x5a   :  { %p2330_p12 = scmp.ne.s32.totalorder %s2733_s7, %s2329_s22  ;;  %p2333_p13 = scmp.lt.u32.totalorder %s2329_s22, %s2733_s7 }
  0x5c   :  { %p2335_p0 = pnand %p2333_p13, %p2330_p12 }
  0x5e   :  { %2338 = shalt.err (!%p2335_p0)
}
  0x5f   :  { %s2339_s17 = scalar_lea.vmem %s2582_s1, 1024  ;;  %p2344_p2 = scmp.lt.s32.totalorder %s2582_s1, %s2582_s1 }
  0x60   :  { %p2340_p1 = scmp.ne.s32.totalorder %s2582_s1, %s2339_s17  ;;  %p2345_p3 = scmp.lt.s32.totalorder %s2339_s17, %s2339_s17 }
  0x62   :  { %p2346_p4 = por %p2345_p3, %p2344_p2 }
  0x64   :  { %p2347_p5 = pnand %p2346_p4, %p2340_p1 }
  0x66   :  { %2350 = shalt.err (!%p2347_p5)
}
  0x67   :  { %91 = dma.hbm_to_vmem [thread:$0]  %s2733_s7, 1024, %s2582_s1, [#allocation9], %s2434_s30, %s2434_s30, %s2435_s25  }
  0x68   :  { %s2441_s18 = smov [#allocation13]   ;;  %s2351_s26 = scalar_lea.hbm %s2737_s11, 4096 }
  0x69   :  { %s113_s19 = sshll.u32 %s2441_s18, 4  ;;  %p2352_p6 = scmp.ne.s32.totalorder %s2737_s11, %s2351_s26  ;;  %s114_s19 = int_to_ptr.vmem [resolvable:$true] %s113_s19 }
  0x6a   :  { %p2355_p7 = scmp.lt.u32.totalorder %s2351_s26, %s2737_s11 }
  0x6c   :  { %p2357_p8 = pnand %p2355_p7, %p2352_p6 }
  0x6e   :  { %2360 = shalt.err (!%p2357_p8)
}
  0x6f   :  { %s2361_s28 = scalar_lea.vmem %s114_s19, 4096  ;;  %p2366_p10 = scmp.lt.s32.totalorder %s114_s19, %s114_s19 }
  0x70   :  { %p2362_p9 = scmp.ne.s32.totalorder %s114_s19, %s2361_s28  ;;  %p2367_p11 = scmp.lt.s32.totalorder %s2361_s28, %s2361_s28 }
  0x72   :  { %p2368_p12 = por %p2367_p11, %p2366_p10 }
  0x74   :  { %p2369_p13 = pnand %p2368_p12, %p2362_p9 }
  0x76   :  { %2372 = shalt.err (!%p2369_p13)
}
  0x77   :  { %119 = dma.hbm_to_vmem [thread:$0]  %s2737_s11, 4096, %s114_s19, [#allocation12], %s2434_s30, %s2434_s30, %s2435_s25  }
  0x78   :  { %2417 = dma.done.wait [#allocation3], 256  }
  0x79   :  { %2418 = vsyncadd [#allocation3], 4294967040 }
  0x7a   :  { %2419 = dma.done.wait [#allocation6], 8192  }
  0x7b   :  { %2420 = vsyncadd [#allocation6], 4294959104 }
  0x7c   :  { %2421 = dma.done.wait [#allocation9], 2048  }
  0x7d   :  { %2422 = vsyncadd [#allocation9], 4294965248 }
  0x7e   :  { %2423 = dma.done.wait [#allocation12], 8192  }
  0x7f   :  { %2424 = vsyncadd [#allocation12], 4294959104  ;;  %v2442_v0 = vmov 0   ;;  %v2043_v1 = vld [vmem:[#allocation5 + $0x4] ss:$16 sps:$4 sm:$0xff]   ;;  %v145_v34 = vld [vmem:[#allocation2 + $0x8] sm:$0xff] }
  0x80   :  { %393 = vmatprep.mubr.bf16.mxu0 %v2442_v0  ;;  %436 = vmatprep.mubr.bf16.mxu1 %v2442_v0  ;;  %v2045_v2 = vld [vmem:[#allocation5 + $0xc] ss:$16 sps:$4 sm:$0xff]   ;;  %v2047_v3 = vld [vmem:[#allocation5] ss:$16 sps:$4 sm:$0xff]   ;;  %v2048_v4 = vld [vmem:[#allocation5 + $0x8] ss:$16 sps:$4 sm:$0xff]  }
  0x81   :  { %361 = vmatprep.subr.bf16.mxu0 %v2043_v1  ;;  %404 = vmatprep.subr.bf16.mxu1 %v2045_v2  ;;  %v2049_v5 = vld [vmem:[#allocation5 + $0x24] ss:$16 sps:$4 sm:$0xff]   ;;  %v2051_v6 = vld [vmem:[#allocation5 + $0x2c] ss:$16 sps:$4 sm:$0xff]   ;;  %v2053_v7 = vld [vmem:[#allocation5 + $0x20] ss:$16 sps:$4 sm:$0xff]  }
  0x82   :  { %362 = vmatpush1.bf16.msra.mxu0 %v2047_v3  ;;  %405 = vmatpush1.bf16.msra.mxu1 %v2048_v4  ;;  %v2054_v8 = vld [vmem:[#allocation5 + $0x28] ss:$16 sps:$4 sm:$0xff]   ;;  %v2055_v9 = vld [vmem:[#allocation5 + $0x44] ss:$16 sps:$4 sm:$0xff]   ;;  %v2057_v10 = vld [vmem:[#allocation5 + $0x4c] ss:$16 sps:$4 sm:$0xff]  }
  0x83   :  { %363 = vmatprep.subr.bf16.mxu0 %v2049_v5  ;;  %406 = vmatprep.subr.bf16.mxu1 %v2051_v6  ;;  %v2059_v11 = vld [vmem:[#allocation5 + $0x40] ss:$16 sps:$4 sm:$0xff]   ;;  %v2060_v12 = vld [vmem:[#allocation5 + $0x48] ss:$16 sps:$4 sm:$0xff]   ;;  %v2061_v13 = vld [vmem:[#allocation5 + $0x64] ss:$16 sps:$4 sm:$0xff]   ;;  %v181_v6 = vlaneseq }
  0x84   :  { %v2063_v14 = vld [vmem:[#allocation5 + $0x6c] ss:$16 sps:$4 sm:$0xff]   ;;  %v2065_v15 = vld [vmem:[#allocation5 + $0x60] ss:$16 sps:$4 sm:$0xff]   ;;  %v2066_v16 = vld [vmem:[#allocation5 + $0x68] ss:$16 sps:$4 sm:$0xff]  }
  0x85   :  { %v2067_v17 = vld [vmem:[#allocation5 + $0x84] ss:$16 sps:$4 sm:$0xff]   ;;  %v2069_v18 = vld [vmem:[#allocation5 + $0x8c] ss:$16 sps:$4 sm:$0xff]   ;;  %v2071_v19 = vld [vmem:[#allocation5 + $0x80] ss:$16 sps:$4 sm:$0xff]  }
  0x86   :  { %364 = vmatpush1.bf16.msra.mxu0 %v2053_v7  ;;  %407 = vmatpush1.bf16.msra.mxu1 %v2054_v8  ;;  %v2072_v20 = vld [vmem:[#allocation5 + $0x88] ss:$16 sps:$4 sm:$0xff]   ;;  %v2073_v21 = vld [vmem:[#allocation5 + $0xa4] ss:$16 sps:$4 sm:$0xff]   ;;  %v2075_v22 = vld [vmem:[#allocation5 + $0xac] ss:$16 sps:$4 sm:$0xff]  }
  0x87   :  { %365 = vmatprep.subr.bf16.mxu0 %v2055_v9  ;;  %408 = vmatprep.subr.bf16.mxu1 %v2057_v10  ;;  %v2077_v23 = vld [vmem:[#allocation5 + $0xa0] ss:$16 sps:$4 sm:$0xff]   ;;  %v2078_v24 = vld [vmem:[#allocation5 + $0xa8] ss:$16 sps:$4 sm:$0xff]   ;;  %v2079_v25 = vld [vmem:[#allocation5 + $0xc4] ss:$16 sps:$4 sm:$0xff]  }
  0x88   :  { %v2081_v26 = vld [vmem:[#allocation5 + $0xcc] ss:$16 sps:$4 sm:$0xff]   ;;  %v2083_v27 = vld [vmem:[#allocation5 + $0xc0] ss:$16 sps:$4 sm:$0xff]   ;;  %v2084_v28 = vld [vmem:[#allocation5 + $0xc8] ss:$16 sps:$4 sm:$0xff]  }
  0x89   :  { %v2085_v29 = vld [vmem:[#allocation5 + $0xe4] ss:$16 sps:$4 sm:$0xff]   ;;  %v2087_v30 = vld [vmem:[#allocation5 + $0xec] ss:$16 sps:$4 sm:$0xff]   ;;  %v2089_v31 = vld [vmem:[#allocation5 + $0xe0] ss:$16 sps:$4 sm:$0xff]  }
  0x8a   :  { %366 = vmatpush1.bf16.msra.mxu0 %v2059_v11  ;;  %409 = vmatpush1.bf16.msra.mxu1 %v2060_v12  ;;  %v2090_v32 = vld [vmem:[#allocation5 + $0xe8] ss:$16 sps:$4 sm:$0xff]   ;;  %v144_v33 = vld [vmem:[#allocation2] sm:$0xff]  ;;  %v2091_v35 = vld [vmem:[#allocation7 + $0x40] sm:$0xff]   ;;  %v2443_v5 = vmov 0.0   ;;  %v2638_v7 = vshrl.u32 %v181_v6, 7 }
  0x8b   :  { %367 = vmatprep.subr.bf16.mxu0 %v2061_v13  ;;  %410 = vmatprep.subr.bf16.mxu1 %v2063_v14  ;;  %v2092_v36 = vld [vmem:[#allocation7 + $0xc0] sm:$0xff]   ;;  %v146_v38 = vpack.c.bf16 %v145_v34, %v144_v33  ;;  %v2095_v40 = vld [vmem:[#allocation7 + $0x48] sm:$0xff]   ;;  %v2099_v44 = vld [vmem:[#allocation7 + $0x50] sm:$0xff]   ;;  %vm2444_vm0 = vmmov 0  }
  0x8c   :  { %v2093_v37 = vld [vmem:[#allocation7] sm:$0xff]   ;;  %v2096_v41 = vld [vmem:[#allocation7 + $0xc8] sm:$0xff]   ;;  %v2100_v45 = vld [vmem:[#allocation7 + $0xd0] sm:$0xff]   ;;  %v183_v8 = vsub.s32 0, %v2638_v7  ;;  %v191_v9 = vsub.s32 2, %v2638_v7  ;;  %v187_v11 = vsub.s32 1, %v2638_v7 }
  0x8d   :  { %v2094_v39 = vld [vmem:[#allocation7 + $0x80] sm:$0xff]   ;;  %v2097_v42 = vld [vmem:[#allocation7 + $0x8] sm:$0xff]   ;;  %v2101_v46 = vld [vmem:[#allocation7 + $0x10] sm:$0xff]   ;;  %v195_v12 = vsub.s32 3, %v2638_v7 }
  0x8e   :  { %368 = vmatpush1.bf16.msra.mxu0 %v2065_v15  ;;  %411 = vmatpush1.bf16.msra.mxu1 %v2066_v16  ;;  %v2098_v43 = vld [vmem:[#allocation7 + $0x88] sm:$0xff]   ;;  %v2102_v47 = vld [vmem:[#allocation7 + $0x90] sm:$0xff]   ;;  %v2103_v48 = vld [vmem:[#allocation7 + $0x58] sm:$0xff]  }
  0x8f   :  { %369 = vmatprep.subr.bf16.mxu0 %v2067_v17  ;;  %412 = vmatprep.subr.bf16.mxu1 %v2069_v18  ;;  %v2104_v49 = vld [vmem:[#allocation7 + $0xd8] sm:$0xff]   ;;  %v2107_v52 = vld [vmem:[#allocation7 + $0x60] sm:$0xff]   ;;  %v2111_v56 = vld [vmem:[#allocation7 + $0x68] sm:$0xff]  }
  0x90   :  { %v2105_v50 = vld [vmem:[#allocation7 + $0x18] sm:$0xff]   ;;  %v2108_v53 = vld [vmem:[#allocation7 + $0xe0] sm:$0xff]   ;;  %v2112_v57 = vld [vmem:[#allocation7 + $0xe8] sm:$0xff]  }
  0x91   :  { %v2106_v51 = vld [vmem:[#allocation7 + $0x98] sm:$0xff]   ;;  %v2109_v54 = vld [vmem:[#allocation7 + $0x20] sm:$0xff]   ;;  %v2113_v58 = vld [vmem:[#allocation7 + $0x28] sm:$0xff]  }
  0x92   :  { %370 = vmatpush1.bf16.msra.mxu0 %v2071_v19  ;;  %413 = vmatpush1.bf16.msra.mxu1 %v2072_v20  ;;  %v2110_v55 = vld [vmem:[#allocation7 + $0xa0] sm:$0xff]   ;;  %v2114_v59 = vld [vmem:[#allocation7 + $0xa8] sm:$0xff]   ;;  %v2115_v60 = vld [vmem:[#allocation7 + $0x70] sm:$0xff]  }
  0x93   :  { %371 = vmatprep.subr.bf16.mxu0 %v2073_v21  ;;  %414 = vmatprep.subr.bf16.mxu1 %v2075_v22  ;;  %v2116_v61 = vld [vmem:[#allocation7 + $0xf0] sm:$0xff]   ;;  %v2119_v1 = vld [vmem:[#allocation7 + $0x78] sm:$0xff]  }
  0x94   :  { %v2117_v62 = vld [vmem:[#allocation7 + $0x30] sm:$0xff]   ;;  %v2120_v2 = vld [vmem:[#allocation7 + $0xf8] sm:$0xff]  }
  0x95   :  { %v2118_v63 = vld [vmem:[#allocation7 + $0xb0] sm:$0xff]   ;;  %v2121_v3 = vld [vmem:[#allocation7 + $0x38] sm:$0xff]  }
  0x96   :  { %372 = vmatpush1.bf16.msra.mxu0 %v2077_v23  ;;  %415 = vmatpush1.bf16.msra.mxu1 %v2078_v24  ;;  %v2122_v4 = vld [vmem:[#allocation7 + $0xb8] sm:$0xff]   ;;  %v179_v10 = vld [vmem:[%s2728_s2] sm:$0xf] }
  0x97   :  { %373 = vmatprep.subr.bf16.mxu0 %v2079_v25  ;;  %416 = vmatprep.subr.bf16.mxu1 %v2081_v26  ;;  %v184_v13 = vrot.slane %v179_v10, %v183_v8  ;;  %v192_v14 = vrot.slane %v179_v10, %v191_v9  ;;  %v188_v15 = vrot.slane %v179_v10, %v187_v11 }
  0x98   :  { %v196_v16 = vrot.slane %v179_v10, %v195_v12 }
  0x9a   :  { %374 = vmatpush1.bf16.msra.mxu0 %v2083_v27  ;;  %417 = vmatpush1.bf16.msra.mxu1 %v2084_v28 }
  0x9b   :  { %375 = vmatprep.subr.bf16.mxu0 %v2085_v29  ;;  %418 = vmatprep.subr.bf16.mxu1 %v2087_v30 }
  0x9e   :  { %376 = vmatpush1.bf16.msra.mxu0 %v2089_v31  ;;  %419 = vmatpush1.bf16.msra.mxu1 %v2090_v32 }
  0x9f   :  { %1879 = vmatprep.subr.bf16.mxu0 %v2091_v35  ;;  %1901 = vmatprep.subr.bf16.mxu1 %v2092_v36 }
  0xa1   :  { %394 = vmatmul.mubr.bf16.vlgmr.msra.gmra.mrb[0].mxu0 %v146_v38  ;;  %437 = vmatmul.mubr.bf16.vlgmr.msra.gmra.mrb[0].mxu1 %v146_v38 }
  0xa2   :  { %1880 = vmatpush3.bf16.msra.mxu0 %v2093_v37  ;;  %1902 = vmatpush3.bf16.msra.mxu1 %v2094_v39 }
  0xa3   :  { %1881 = vmatprep.subr.bf16.mxu0 %v2095_v40  ;;  %1903 = vmatprep.subr.bf16.mxu1 %v2096_v41 }
  0xa6   :  { %1882 = vmatpush3.bf16.msra.mxu0 %v2097_v42  ;;  %1904 = vmatpush3.bf16.msra.mxu1 %v2098_v43 }
  0xa7   :  { %1883 = vmatprep.subr.bf16.mxu0 %v2099_v44  ;;  %1905 = vmatprep.subr.bf16.mxu1 %v2100_v45  ;;  %v2123_v45 = vld [vmem:[#allocation8] sm:$0xff]  }
  0xaa   :  { %1884 = vmatpush3.bf16.msra.mxu0 %v2101_v46  ;;  %1906 = vmatpush3.bf16.msra.mxu1 %v2102_v47  ;;  %v2124_v46 = vld [vmem:[#allocation10] sm:$0xff]   ;;  %v2125_v47 = vld [vmem:[#allocation8 + $0x8] sm:$0xff]  }
  0xab   :  { %1885 = vmatprep.subr.bf16.mxu0 %v2103_v48  ;;  %1907 = vmatprep.subr.bf16.mxu1 %v2104_v49  ;;  %v2126_v48 = vld [vmem:[#allocation10 + $0x8] sm:$0xff]   ;;  %v2127_v49 = vld [vmem:[#allocation8 + $0x10] sm:$0xff]  }
  0xae   :  { %1886 = vmatpush3.bf16.msra.mxu0 %v2105_v50  ;;  %1908 = vmatpush3.bf16.msra.mxu1 %v2106_v51  ;;  %v2128_v50 = vld [vmem:[#allocation10 + $0x10] sm:$0xff]   ;;  %v2129_v51 = vld [vmem:[#allocation8 + $0x18] sm:$0xff]  }
  0xaf   :  { %1887 = vmatprep.subr.bf16.mxu0 %v2107_v52  ;;  %1909 = vmatprep.subr.bf16.mxu1 %v2108_v53  ;;  %v2130_v52 = vld [vmem:[#allocation10 + $0x18] sm:$0xff]   ;;  %v2131_v53 = vld [vmem:[#allocation8 + $0x20] sm:$0xff]  }
  0xb2   :  { %1888 = vmatpush3.bf16.msra.mxu0 %v2109_v54  ;;  %1910 = vmatpush3.bf16.msra.mxu1 %v2110_v55  ;;  %v2132_v54 = vld [vmem:[#allocation10 + $0x20] sm:$0xff]   ;;  %v2133_v55 = vld [vmem:[#allocation8 + $0x28] sm:$0xff]  }
  0xb3   :  { %1889 = vmatprep.subr.bf16.mxu0 %v2111_v56  ;;  %1911 = vmatprep.subr.bf16.mxu1 %v2112_v57  ;;  %v2134_v56 = vld [vmem:[#allocation10 + $0x28] sm:$0xff]   ;;  %v2135_v57 = vld [vmem:[#allocation8 + $0x30] sm:$0xff]  }
  0xb6   :  { %1890 = vmatpush3.bf16.msra.mxu0 %v2113_v58  ;;  %1912 = vmatpush3.bf16.msra.mxu1 %v2114_v59  ;;  %v2136_v58 = vld [vmem:[#allocation10 + $0x30] sm:$0xff]   ;;  %v2137_v59 = vld [vmem:[#allocation8 + $0x38] sm:$0xff]  }
  0xb7   :  { %1891 = vmatprep.subr.bf16.mxu0 %v2115_v60  ;;  %1913 = vmatprep.subr.bf16.mxu1 %v2116_v61  ;;  %v2138_v60 = vld [vmem:[#allocation10 + $0x38] sm:$0xff]   ;;  %v2141_v61 = vld [vmem:[#allocation11 + $0x4] ss:$16 sps:$4 sm:$0xff]  }
  0xba   :  { %1892 = vmatpush3.bf16.msra.mxu0 %v2117_v62  ;;  %1914 = vmatpush3.bf16.msra.mxu1 %v2118_v63  ;;  %v2144_v62 = vld [vmem:[#allocation11 + $0xc] ss:$16 sps:$4 sm:$0xff]  }
  0xbb   :  { %1893 = vmatprep.subr.bf16.mxu0 %v2119_v1  ;;  %1915 = vmatprep.subr.bf16.mxu1 %v2120_v2  ;;  %v1763_v2 = vld [vmem:[%s2730_s4] ss:$0 sm:$0xff] }
  0xbe   :  { %1894 = vmatpush3.bf16.msra.mxu0 %v2121_v3  ;;  %1916 = vmatpush3.bf16.msra.mxu1 %v2122_v4 }
  0xbf   :  { %1985 = vmatprep.subr.bf16.mxu0 %v2443_v5  ;;  %2005 = vmatprep.subr.bf16.mxu1 %v2443_v5 }
 0x174   :  { %v395_v17 = vpop.f32.mrb[0].mxu0  ;;  %v438_v18 = vpop.f32.mrb[0].mxu1 }
 0x175   :  { %v396_v19 = vadd.f32 %v395_v17, %v184_v13  ;;  %v439_v20 = vadd.f32 %v438_v18, %v192_v14  ;;  %v397_v21 = vpop.f32.mrb[1].mxu0  ;;  %v440_v22 = vpop.f32.mrb[1].mxu1 }
 0x176   :  { %v398_v23 = vadd.f32 %v397_v21, %v188_v15  ;;  %v441_v24 = vadd.f32 %v440_v22, %v196_v16  ;;  %v399_v25 = vpop.f32.mrb[2].mxu0  ;;  %v442_v26 = vpop.f32.mrb[2].mxu1 }
 0x177   :  { %v449_v27 = vmax.f32 %v439_v20, 0.0  ;;  %v400_v28 = vadd.f32 %v399_v25, %v184_v13  ;;  %v443_v29 = vadd.f32 %v442_v26, %v192_v14  ;;  %v401_v30 = vpop.f32.mrb[3].mxu0  ;;  %v444_v31 = vpop.f32.mrb[3].mxu1  ;;  %v447_v35 = vmax.f32 %v396_v19, 0.0  ;;  %v2142_v25 = vld [vmem:[#allocation11 + $0x8] ss:$16 sps:$4 sm:$0xff]  }
 0x178   :  { %v450_v32 = vmax.f32 %v441_v24, 0.0  ;;  %v402_v33 = vadd.f32 %v401_v30, %v188_v15  ;;  %v445_v34 = vadd.f32 %v444_v31, %v196_v16  ;;  %v448_v38 = vmax.f32 %v398_v23, 0.0  ;;  %v2139_v24 = vld [vmem:[#allocation11] ss:$16 sps:$4 sm:$0xff]   ;;  %v2148_v30 = vld [vmem:[#allocation11 + $0x28] ss:$16 sps:$4 sm:$0xff]  }
 0x179   :  { %v451_v36 = vmax.f32 %v400_v28, 0.0  ;;  %v453_v37 = vmax.f32 %v443_v29, 0.0  ;;  %v2150_v28 = vld [vmem:[#allocation11 + $0x2c] ss:$16 sps:$4 sm:$0xff]   ;;  %v2145_v29 = vld [vmem:[#allocation11 + $0x20] ss:$16 sps:$4 sm:$0xff]  }
 0x17a   :  { %v452_v39 = vmax.f32 %v402_v33, 0.0  ;;  %v454_v40 = vmax.f32 %v445_v34, 0.0  ;;  %v2153_v31 = vld [vmem:[#allocation11 + $0x44] ss:$16 sps:$4 sm:$0xff]   ;;  %v2151_v33 = vld [vmem:[#allocation11 + $0x40] ss:$16 sps:$4 sm:$0xff]  }
 0x17b   :  { %v455_v41 = vpack.c.bf16 %v451_v36, %v447_v35  ;;  %v457_v42 = vpack.c.bf16 %v453_v37, %v449_v27  ;;  %v2147_v27 = vld [vmem:[#allocation11 + $0x24] ss:$16 sps:$4 sm:$0xff]   ;;  %v2154_v34 = vld [vmem:[#allocation11 + $0x48] ss:$16 sps:$4 sm:$0xff]   ;;  %v2162_v36 = vld [vmem:[#allocation11 + $0x6c] ss:$16 sps:$4 sm:$0xff]  }
 0x17c   :  { %v456_v43 = vpack.c.bf16 %v452_v39, %v448_v38  ;;  %v458_v44 = vpack.c.bf16 %v454_v40, %v450_v32  ;;  %v2156_v32 = vld [vmem:[#allocation11 + $0x4c] ss:$16 sps:$4 sm:$0xff]   ;;  %v2159_v35 = vld [vmem:[#allocation11 + $0x64] ss:$16 sps:$4 sm:$0xff]   ;;  %v2157_v37 = vld [vmem:[#allocation11 + $0x60] ss:$16 sps:$4 sm:$0xff]  }
 0x17d   :  { %v2160_v38 = vld [vmem:[#allocation11 + $0x68] ss:$16 sps:$4 sm:$0xff]   ;;  %v2165_v39 = vld [vmem:[#allocation11 + $0x84] ss:$16 sps:$4 sm:$0xff]   ;;  %v2168_v40 = vld [vmem:[#allocation11 + $0x8c] ss:$16 sps:$4 sm:$0xff]  }
 0x17e   :  { %754 = vmatprep.mubr.bf16.mxu0 %v456_v43  ;;  %795 = vmatprep.mubr.bf16.mxu1 %v458_v44  ;;  %v2174_v43 = vld [vmem:[#allocation11 + $0xac] ss:$16 sps:$4 sm:$0xff]   ;;  %v2169_v44 = vld [vmem:[#allocation11 + $0xa0] ss:$16 sps:$4 sm:$0xff]  }
 0x17f   :  { %755 = vmatmul.mubr.bf16.vlgmr.msra.gmra.mrb[4].mxu0 %v455_v41  ;;  %796 = vmatmul.mubr.bf16.vlgmr.msra.gmra.mrb[4].mxu1 %v457_v42  ;;  %v2163_v41 = vld [vmem:[#allocation11 + $0x80] ss:$16 sps:$4 sm:$0xff]   ;;  %v2171_v42 = vld [vmem:[#allocation11 + $0xa4] ss:$16 sps:$4 sm:$0xff]  }
 0x180   :  { %1986 = vmatpush3.bf16.msra.mxu0 %v2123_v45  ;;  %2006 = vmatpush3.bf16.msra.mxu1 %v2124_v46  ;;  %v2172_v45 = vld [vmem:[#allocation11 + $0xa8] ss:$16 sps:$4 sm:$0xff]   ;;  %v2177_v46 = vld [vmem:[#allocation11 + $0xc4] ss:$16 sps:$4 sm:$0xff]  }
 0x181   :  { %1987 = vmatprep.subr.bf16.mxu0 %v2443_v5  ;;  %2007 = vmatprep.subr.bf16.mxu1 %v2443_v5 }
 0x182   :  { %2001 = vmatprep.mubr.msk.bf16.mxu0 %vm2444_vm0, %v2443_v5  ;;  %2021 = vmatprep.mubr.msk.bf16.mxu1 %vm2444_vm0, %v2443_v5 }
 0x184   :  { %1988 = vmatpush3.bf16.msra.mxu0 %v2125_v47  ;;  %2008 = vmatpush3.bf16.msra.mxu1 %v2126_v48  ;;  %v2180_v47 = vld [vmem:[#allocation11 + $0xcc] ss:$16 sps:$4 sm:$0xff]   ;;  %v2175_v48 = vld [vmem:[#allocation11 + $0xc0] ss:$16 sps:$4 sm:$0xff]  }
 0x185   :  { %1989 = vmatprep.subr.bf16.mxu0 %v2443_v5  ;;  %2009 = vmatprep.subr.bf16.mxu1 %v2443_v5 }
 0x188   :  { %1990 = vmatpush3.bf16.msra.mxu0 %v2127_v49  ;;  %2010 = vmatpush3.bf16.msra.mxu1 %v2128_v50  ;;  %v2178_v49 = vld [vmem:[#allocation11 + $0xc8] ss:$16 sps:$4 sm:$0xff]   ;;  %v2183_v50 = vld [vmem:[#allocation11 + $0xe4] ss:$16 sps:$4 sm:$0xff]  }
 0x189   :  { %1991 = vmatprep.subr.bf16.mxu0 %v2443_v5  ;;  %2011 = vmatprep.subr.bf16.mxu1 %v2443_v5 }
 0x18c   :  { %1992 = vmatpush3.bf16.msra.mxu0 %v2129_v51  ;;  %2012 = vmatpush3.bf16.msra.mxu1 %v2130_v52  ;;  %v2186_v51 = vld [vmem:[#allocation11 + $0xec] ss:$16 sps:$4 sm:$0xff]   ;;  %v2181_v52 = vld [vmem:[#allocation11 + $0xe0] ss:$16 sps:$4 sm:$0xff]  }
 0x18d   :  { %1993 = vmatprep.subr.bf16.mxu0 %v2443_v5  ;;  %2013 = vmatprep.subr.bf16.mxu1 %v2443_v5 }
 0x190   :  { %1994 = vmatpush3.bf16.msra.mxu0 %v2131_v53  ;;  %2014 = vmatpush3.bf16.msra.mxu1 %v2132_v54  ;;  %v2184_v53 = vld [vmem:[#allocation11 + $0xe8] ss:$16 sps:$4 sm:$0xff]   ;;  %v2187_v54 = vld [vmem:[#allocation13 + $0x40] sm:$0xff]  }
 0x191   :  { %1995 = vmatprep.subr.bf16.mxu0 %v2443_v5  ;;  %2015 = vmatprep.subr.bf16.mxu1 %v2443_v5 }
 0x194   :  { %1996 = vmatpush3.bf16.msra.mxu0 %v2133_v55  ;;  %2016 = vmatpush3.bf16.msra.mxu1 %v2134_v56  ;;  %v2188_v55 = vld [vmem:[#allocation13 + $0xc0] sm:$0xff]   ;;  %v1796_v56 = vld [vmem:[%s2732_s6] ss:$0 sm:$0xff] }
 0x195   :  { %1997 = vmatprep.subr.bf16.mxu0 %v2443_v5  ;;  %2017 = vmatprep.subr.bf16.mxu1 %v2443_v5 }
 0x198   :  { %1998 = vmatpush3.bf16.msra.mxu0 %v2135_v57  ;;  %2018 = vmatpush3.bf16.msra.mxu1 %v2136_v58  ;;  %v1805_v57 = vld [vmem:[%s2734_s8] ss:$0 sm:$0xff] }
 0x199   :  { %1999 = vmatprep.subr.bf16.mxu0 %v2443_v5  ;;  %2019 = vmatprep.subr.bf16.mxu1 %v2443_v5 }
 0x19c   :  { %2000 = vmatpush3.bf16.msra.mxu0 %v2137_v59  ;;  %2020 = vmatpush3.bf16.msra.mxu1 %v2138_v60 }
 0x19d   :  { %1250 = vmatprep.subr.bf16.mxu0 %v2141_v61  ;;  %1293 = vmatprep.subr.bf16.mxu1 %v2144_v62 }
 0x252   :  { %v1895_v63 = vpop.f32.mrb[4].mxu0  ;;  %v1917_v1 = vpop.f32.mrb[4].mxu1 }
 0x253   :  { %v1896_v3 = vpop.f32.mrb[5].mxu0  ;;  %v1918_v4 = vpop.f32.mrb[5].mxu1 }
 0x254   :  { %v1897_v6 = vadd.f32 %v1896_v3, %v1895_v63  ;;  %v1919_v10 = vadd.f32 %v1918_v4, %v1917_v1  ;;  %v1898_v13 = vpop.f32.mrb[6].mxu0  ;;  %v1920_v14 = vpop.f32.mrb[6].mxu1 }
 0x255   :  { %v1899_v15 = vpop.f32.mrb[7].mxu0  ;;  %v1921_v16 = vpop.f32.mrb[7].mxu1 }
 0x256   :  { %v757_v17 = vadd.f32 %v1897_v6, %v1763_v2  ;;  %v1900_v5 = vadd.f32 %v1899_v15, %v1898_v13  ;;  %v1922_v18 = vadd.f32 %v1921_v16, %v1920_v14  ;;  %v2189_v15 = vld [vmem:[#allocation13] sm:$0xff]  }
 0x257   :  { %v2190_v16 = vld [vmem:[#allocation13 + $0x80] sm:$0xff]  }
 0x258   :  { %v798_v19 = vadd.f32 %v1919_v10, %v757_v17  ;;  %v760_v20 = vadd.f32 %v1900_v5, %v1763_v2  ;;  %v2191_v5 = vld [vmem:[#allocation13 + $0x48] sm:$0xff]  }
 0x25a   :  { %v801_v21 = vadd.f32 %v1922_v18, %v760_v20  ;;  %v804_v22 = vmax.f32 %v798_v19, 0.0  ;;  %v2192_v18 = vld [vmem:[#allocation13 + $0xc8] sm:$0xff]  }
 0x25b   :  { %v2193_v19 = vld [vmem:[#allocation13 + $0x8] sm:$0xff]  }
 0x25c   :  { %v805_v23 = vmax.f32 %v801_v21, 0.0  ;;  %v2194_v20 = vld [vmem:[#allocation13 + $0x88] sm:$0xff]   ;;  %v2195_v21 = vld [vmem:[#allocation13 + $0x50] sm:$0xff]  }
 0x25e   :  { %v806_v26 = vpack.c.bf16 %v805_v23, %v804_v22  ;;  %v2196_v22 = vld [vmem:[#allocation13 + $0xd0] sm:$0xff]  }
 0x25f   :  { %v2197_v23 = vld [vmem:[#allocation13 + $0x10] sm:$0xff]  }
 0x260   :  { %2002 = vmatmul.mubr.bf16.vlgmr.msra.gmra.mrb[8].mxu0 %v806_v26  ;;  %2022 = vmatmul.mubr.bf16.vlgmr.msra.gmra.mrb[8].mxu1 %v806_v26  ;;  %v2200_v26 = vld [vmem:[#allocation13 + $0xd8] sm:$0xff]  }
 0x261   :  { %1251 = vmatpush1.bf16.msra.mxu0 %v2139_v24  ;;  %1294 = vmatpush1.bf16.msra.mxu1 %v2142_v25  ;;  %v2198_v24 = vld [vmem:[#allocation13 + $0x90] sm:$0xff]   ;;  %v2199_v25 = vld [vmem:[#allocation13 + $0x58] sm:$0xff]  }
 0x262   :  { %1252 = vmatprep.subr.bf16.mxu0 %v2147_v27  ;;  %1295 = vmatprep.subr.bf16.mxu1 %v2150_v28  ;;  %v2201_v27 = vld [vmem:[#allocation13 + $0x18] sm:$0xff]  }
 0x263   :  { %1282 = vmatprep.mubr.bf16.mxu0 %v2442_v0  ;;  %1325 = vmatprep.mubr.bf16.mxu1 %v2442_v0  ;;  %v2166_v0 = vld [vmem:[#allocation11 + $0x88] ss:$16 sps:$4 sm:$0xff]  }
 0x264   :  { %v2202_v28 = vld [vmem:[#allocation13 + $0x98] sm:$0xff]  }
 0x265   :  { %1253 = vmatpush1.bf16.msra.mxu0 %v2145_v29  ;;  %1296 = vmatpush1.bf16.msra.mxu1 %v2148_v30  ;;  %v2203_v29 = vld [vmem:[#allocation13 + $0x60] sm:$0xff]  }
 0x266   :  { %1254 = vmatprep.subr.bf16.mxu0 %v2153_v31  ;;  %1297 = vmatprep.subr.bf16.mxu1 %v2156_v32  ;;  %v2204_v30 = vld [vmem:[#allocation13 + $0xe0] sm:$0xff]  }
 0x267   :  { %v2205_v31 = vld [vmem:[#allocation13 + $0x20] sm:$0xff]  }
 0x268   :  { %v2206_v32 = vld [vmem:[#allocation13 + $0xa0] sm:$0xff]  }
 0x269   :  { %1255 = vmatpush1.bf16.msra.mxu0 %v2151_v33  ;;  %1298 = vmatpush1.bf16.msra.mxu1 %v2154_v34  ;;  %v2207_v33 = vld [vmem:[#allocation13 + $0x68] sm:$0xff]  }
 0x26a   :  { %1256 = vmatprep.subr.bf16.mxu0 %v2159_v35  ;;  %1299 = vmatprep.subr.bf16.mxu1 %v2162_v36  ;;  %v2208_v34 = vld [vmem:[#allocation13 + $0xe8] sm:$0xff]  }
 0x26b   :  { %v2209_v35 = vld [vmem:[#allocation13 + $0x28] sm:$0xff]  }
 0x26c   :  { %v2210_v36 = vld [vmem:[#allocation13 + $0xa8] sm:$0xff]  }
 0x26d   :  { %1257 = vmatpush1.bf16.msra.mxu0 %v2157_v37  ;;  %1300 = vmatpush1.bf16.msra.mxu1 %v2160_v38  ;;  %v2211_v37 = vld [vmem:[#allocation13 + $0x70] sm:$0xff]  }
 0x26e   :  { %1258 = vmatprep.subr.bf16.mxu0 %v2165_v39  ;;  %1301 = vmatprep.subr.bf16.mxu1 %v2168_v40  ;;  %v2212_v38 = vld [vmem:[#allocation13 + $0xf0] sm:$0xff]  }
 0x26f   :  { %v2213_v39 = vld [vmem:[#allocation13 + $0x30] sm:$0xff]  }
 0x270   :  { %v2214_v40 = vld [vmem:[#allocation13 + $0xb0] sm:$0xff]  }
 0x271   :  { %1259 = vmatpush1.bf16.msra.mxu0 %v2163_v41  ;;  %1302 = vmatpush1.bf16.msra.mxu1 %v2166_v0  ;;  %v2215_v41 = vld [vmem:[#allocation13 + $0x78] sm:$0xff]  }
 0x272   :  { %1260 = vmatprep.subr.bf16.mxu0 %v2171_v42  ;;  %1303 = vmatprep.subr.bf16.mxu1 %v2174_v43  ;;  %v2216_v0 = vld [vmem:[#allocation13 + $0xf8] sm:$0xff]  }
 0x273   :  { %v2217_v42 = vld [vmem:[#allocation13 + $0x38] sm:$0xff]  }
 0x274   :  { %v2218_v43 = vld [vmem:[#allocation13 + $0xb8] sm:$0xff]  }
 0x275   :  { %1261 = vmatpush1.bf16.msra.mxu0 %v2169_v44  ;;  %1304 = vmatpush1.bf16.msra.mxu1 %v2172_v45  ;;  %v1068_v44 = vld [vmem:[%s2736_s10] sm:$0xf]  ;;  %s2445_s10 = smov [#allocation15]  }
 0x276   :  { %1262 = vmatprep.subr.bf16.mxu0 %v2177_v46  ;;  %1305 = vmatprep.subr.bf16.mxu1 %v2180_v47  ;;  %v1073_v45 = vrot.slane %v1068_v44, %v183_v8  ;;  %v1081_v46 = vrot.slane %v1068_v44, %v191_v9  ;;  %v1077_v47 = vrot.slane %v1068_v44, %v187_v11  ;;  %s1712_s17 = sshll.u32 %s2445_s10, 4  ;;  %s1713_s17 = int_to_ptr.vmem [resolvable:$true] %s1712_s17 }
 0x277   :  { %s2373_s3 = scalar_lea.vmem %s1713_s17, 256  ;;  %p2378_p1 = scmp.lt.s32.totalorder %s1713_s17, %s1713_s17 }
 0x278   :  { %p2374_p0 = scmp.ne.s32.totalorder %s1713_s17, %s2373_s3  ;;  %p2379_p2 = scmp.lt.s32.totalorder %s2373_s3, %s2373_s3 }
 0x279   :  { %1263 = vmatpush1.bf16.msra.mxu0 %v2175_v48  ;;  %1306 = vmatpush1.bf16.msra.mxu1 %v2178_v49  ;;  %v1085_v48 = vrot.slane %v1068_v44, %v195_v12 }
 0x27a   :  { %1264 = vmatprep.subr.bf16.mxu0 %v2183_v50  ;;  %1307 = vmatprep.subr.bf16.mxu1 %v2186_v51  ;;  %p2380_p3 = por %p2379_p2, %p2378_p1 }
 0x27c   :  { %p2381_p4 = pnand %p2380_p3, %p2374_p0 }
 0x27d   :  { %1265 = vmatpush1.bf16.msra.mxu0 %v2181_v52  ;;  %1308 = vmatpush1.bf16.msra.mxu1 %v2184_v53 }
 0x27e   :  { %1941 = vmatprep.subr.bf16.mxu0 %v2187_v54  ;;  %1963 = vmatprep.subr.bf16.mxu1 %v2188_v55 }
 0x333   :  { %v912_v58 = vpop.f32.mrb[8].mxu0  ;;  %v1026_v59 = vpop.f32.mrb[8].mxu1 }
 0x334   :  { %v913_v60 = vadd.f32 %v1796_v56, %v912_v58  ;;  %v1027_v61 = vadd.f32 %v1805_v57, %v1026_v59  ;;  %v2003_v62 = vpop.f32.mrb[9].mxu0  ;;  %v2023_v63 = vpop.f32.mrb[9].mxu1 }
 0x335   :  { %v915_v1 = vpop.f32.mrb[10].mxu0  ;;  %v1029_v2 = vpop.f32.mrb[10].mxu1 }
 0x336   :  { %919 = vst [vmem:[#allocation15] sm:$0xff] %v913_v60  ;;  %v916_v3 = vadd.f32 %v1796_v56, %v915_v1  ;;  %v1030_v4 = vadd.f32 %v1805_v57, %v1029_v2  ;;  %v2004_v6 = vpop.f32.mrb[11].mxu0  ;;  %v2024_v10 = vpop.f32.mrb[11].mxu1  ;;  %v1033_v13 = vmax.f32 %v1027_v61, 0.0 }
 0x338   :  { %920 = vst [vmem:[#allocation15 + $0x8] sm:$0xff] %v916_v3  ;;  %v1034_v14 = vmax.f32 %v1030_v4, 0.0 }
 0x33a   :  { %v1035_v17 = vpack.c.bf16 %v1034_v14, %v1033_v13 }
 0x33c   :  { %1283 = vmatmul.mubr.bf16.vlgmr.msra.gmra.mrb[12].mxu0 %v1035_v17  ;;  %1326 = vmatmul.mubr.bf16.vlgmr.msra.gmra.mrb[12].mxu1 %v1035_v17 }
 0x33d   :  { %1942 = vmatpush3.bf16.msra.mxu0 %v2189_v15  ;;  %1964 = vmatpush3.bf16.msra.mxu1 %v2190_v16 }
 0x33e   :  { %1943 = vmatprep.subr.bf16.mxu0 %v2191_v5  ;;  %1965 = vmatprep.subr.bf16.mxu1 %v2192_v18 }
 0x341   :  { %1944 = vmatpush3.bf16.msra.mxu0 %v2193_v19  ;;  %1966 = vmatpush3.bf16.msra.mxu1 %v2194_v20 }
 0x342   :  { %1945 = vmatprep.subr.bf16.mxu0 %v2195_v21  ;;  %1967 = vmatprep.subr.bf16.mxu1 %v2196_v22 }
 0x345   :  { %1946 = vmatpush3.bf16.msra.mxu0 %v2197_v23  ;;  %1968 = vmatpush3.bf16.msra.mxu1 %v2198_v24 }
 0x346   :  { %1947 = vmatprep.subr.bf16.mxu0 %v2199_v25  ;;  %1969 = vmatprep.subr.bf16.mxu1 %v2200_v26 }
 0x349   :  { %1948 = vmatpush3.bf16.msra.mxu0 %v2201_v27  ;;  %1970 = vmatpush3.bf16.msra.mxu1 %v2202_v28 }
 0x34a   :  { %1949 = vmatprep.subr.bf16.mxu0 %v2203_v29  ;;  %1971 = vmatprep.subr.bf16.mxu1 %v2204_v30 }
 0x34d   :  { %1950 = vmatpush3.bf16.msra.mxu0 %v2205_v31  ;;  %1972 = vmatpush3.bf16.msra.mxu1 %v2206_v32 }
 0x34e   :  { %1951 = vmatprep.subr.bf16.mxu0 %v2207_v33  ;;  %1973 = vmatprep.subr.bf16.mxu1 %v2208_v34 }
 0x351   :  { %1952 = vmatpush3.bf16.msra.mxu0 %v2209_v35  ;;  %1974 = vmatpush3.bf16.msra.mxu1 %v2210_v36 }
 0x352   :  { %1953 = vmatprep.subr.bf16.mxu0 %v2211_v37  ;;  %1975 = vmatprep.subr.bf16.mxu1 %v2212_v38 }
 0x355   :  { %1954 = vmatpush3.bf16.msra.mxu0 %v2213_v39  ;;  %1976 = vmatpush3.bf16.msra.mxu1 %v2214_v40 }
 0x356   :  { %1955 = vmatprep.subr.bf16.mxu0 %v2215_v41  ;;  %1977 = vmatprep.subr.bf16.mxu1 %v2216_v0 }
 0x359   :  { %1956 = vmatpush3.bf16.msra.mxu0 %v2217_v42  ;;  %1978 = vmatpush3.bf16.msra.mxu1 %v2218_v43 }
 0x40f   :  { %v1284_v49 = vpop.f32.mrb[12].mxu0  ;;  %v1327_v50 = vpop.f32.mrb[12].mxu1 }
 0x410   :  { %v1285_v51 = vadd.f32 %v1284_v49, %v1073_v45  ;;  %v1328_v52 = vadd.f32 %v1327_v50, %v1081_v46  ;;  %v1286_v53 = vpop.f32.mrb[13].mxu0  ;;  %v1329_v54 = vpop.f32.mrb[13].mxu1 }
 0x411   :  { %v1287_v55 = vadd.f32 %v1286_v53, %v1077_v47  ;;  %v1330_v56 = vadd.f32 %v1329_v54, %v1085_v48  ;;  %v1288_v57 = vpop.f32.mrb[14].mxu0  ;;  %v1331_v58 = vpop.f32.mrb[14].mxu1 }
 0x412   :  { %v1289_v8 = vadd.f32 %v1288_v57, %v1073_v45  ;;  %v1332_v59 = vadd.f32 %v1331_v58, %v1081_v46  ;;  %v1290_v60 = vpop.f32.mrb[15].mxu0  ;;  %v1333_v9 = vpop.f32.mrb[15].mxu1  ;;  %v1336_v11 = vmax.f32 %v1285_v51, 0.0  ;;  %v1338_v63 = vmax.f32 %v1328_v52, 0.0 }
 0x413   :  { %v1291_v61 = vadd.f32 %v1290_v60, %v1077_v47  ;;  %v1334_v62 = vadd.f32 %v1333_v9, %v1085_v48  ;;  %v1337_v1 = vmax.f32 %v1287_v55, 0.0  ;;  %v1339_v2 = vmax.f32 %v1330_v56, 0.0 }
 0x414   :  { %v1340_v7 = vmax.f32 %v1289_v8, 0.0  ;;  %v1342_v12 = vmax.f32 %v1332_v59, 0.0 }
 0x415   :  { %v1341_v3 = vmax.f32 %v1291_v61, 0.0  ;;  %v1343_v4 = vmax.f32 %v1334_v62, 0.0 }
 0x416   :  { %v1344_v6 = vpack.c.bf16 %v1340_v7, %v1336_v11  ;;  %v1346_v10 = vpack.c.bf16 %v1342_v12, %v1338_v63 }
 0x417   :  { %v1345_v13 = vpack.c.bf16 %v1341_v3, %v1337_v1  ;;  %v1347_v14 = vpack.c.bf16 %v1343_v4, %v1339_v2 }
 0x419   :  { %1643 = vmatprep.mubr.bf16.mxu0 %v1345_v13  ;;  %1684 = vmatprep.mubr.bf16.mxu1 %v1347_v14 }
 0x41a   :  { %1644 = vmatmul.mubr.bf16.vlgmr.msra.gmra.mrb[16].mxu0 %v1344_v6  ;;  %1685 = vmatmul.mubr.bf16.vlgmr.msra.gmra.mrb[16].mxu1 %v1346_v10 }
 0x41b   :  { %2384 = shalt.err (!%p2381_p4)
}
 0x41c   :  { %s2385_s19 = scalar_lea.hbm %s2740_s14, 256 }
 0x41d   :  { %p2386_p5 = scmp.ne.s32.totalorder %s2740_s14, %s2385_s19  ;;  %p2389_p6 = scmp.lt.u32.totalorder %s2385_s19, %s2740_s14 }
 0x41f   :  { %p2391_p7 = pnand %p2389_p6, %p2386_p5 }
 0x421   :  { %2394 = shalt.err (!%p2391_p7)
}
 0x422   :  { %1718 = dma.vmem_to_hbm [thread:$0]  %s1713_s17, 256, %s2740_s14, [#allocation16], %s2437_s9, %s2437_s9, %s2438_s23  }
 0x423   :  { %v1846_v17 = vld [vmem:[%s2738_s12] ss:$0 sm:$0xff]  ;;  %s2446_s7 = smov [#allocation14]  }
 0x424   :  { %s1700_s1 = sshll.u32 %s2446_s7, 4  ;;  %s1701_s1 = int_to_ptr.vmem [resolvable:$true] %s1700_s1 }
 0x425   :  { %s2395_s12 = scalar_lea.vmem %s1701_s1, 256  ;;  %p2400_p9 = scmp.lt.s32.totalorder %s1701_s1, %s1701_s1 }
 0x426   :  { %p2396_p8 = scmp.ne.s32.totalorder %s1701_s1, %s2395_s12  ;;  %p2401_p10 = scmp.lt.s32.totalorder %s2395_s12, %s2395_s12 }
 0x428   :  { %p2402_p11 = por %p2401_p10, %p2400_p9 }
 0x42a   :  { %p2403_p12 = pnand %p2402_p11, %p2396_p8 }
 0x4ed   :  { %v1957_v15 = vpop.f32.mrb[16].mxu0  ;;  %v1979_v16 = vpop.f32.mrb[16].mxu1 }
 0x4ee   :  { %v1958_v5 = vpop.f32.mrb[17].mxu0  ;;  %v1980_v18 = vpop.f32.mrb[17].mxu1 }
 0x4ef   :  { %v1959_v19 = vadd.f32 %v1958_v5, %v1957_v15  ;;  %v1981_v20 = vadd.f32 %v1980_v18, %v1979_v16  ;;  %v1960_v21 = vpop.f32.mrb[18].mxu0  ;;  %v1982_v22 = vpop.f32.mrb[18].mxu1 }
 0x4f0   :  { %v1961_v23 = vpop.f32.mrb[19].mxu0  ;;  %v1983_v24 = vpop.f32.mrb[19].mxu1 }
 0x4f1   :  { %v1646_v25 = vadd.f32 %v1959_v19, %v1846_v17  ;;  %v1962_v26 = vadd.f32 %v1961_v23, %v1960_v21  ;;  %v1984_v27 = vadd.f32 %v1983_v24, %v1982_v22 }
 0x4f3   :  { %v1687_v28 = vadd.f32 %v1981_v20, %v1646_v25  ;;  %v1649_v29 = vadd.f32 %v1962_v26, %v1846_v17 }
 0x4f5   :  { %1693 = vst [vmem:[#allocation14] sm:$0xff] %v1687_v28  ;;  %v1690_v30 = vadd.f32 %v1984_v27, %v1649_v29 }
 0x4f7   :  { %1694 = vst [vmem:[#allocation14 + $0x8] sm:$0xff] %v1690_v30 }
 0x4f8   :  { %2406 = shalt.err (!%p2403_p12)
}
 0x4f9   :  { %s2407_s30 = scalar_lea.hbm %s2739_s13, 256 }
 0x4fa   :  { %p2408_p13 = scmp.ne.s32.totalorder %s2739_s13, %s2407_s30  ;;  %p2411_p0 = scmp.lt.u32.totalorder %s2407_s30, %s2739_s13 }
 0x4fc   :  { %p2413_p1 = pnand %p2411_p0, %p2408_p13 }
 0x4fe   :  { %2416 = shalt.err (!%p2413_p1)
}
 0x4ff   :  { %1706 = dma.vmem_to_hbm [thread:$0]  %s1701_s1, 256, %s2739_s13, [#allocation4], %s2437_s9, %s2437_s9, %s2438_s23  }
 0x500   :  { %2425 = dma.done.wait [#allocation4], 256  }
 0x501   :  { %2426 = vsyncadd [#allocation4], 4294967040 }
 0x502   :  { %2427 = dma.done.wait [#allocation16], 256  }
 0x503   :  { %2428 = vsyncadd [#allocation16], 4294967040 }
 0x504   :  { %1725 = vsyncpa [#allocation3], 1 }
 0x505   :  { %1726 = vsyncpa [#allocation6], 1 }
 0x506   :  { %1727 = vsyncpa [#allocation9], 1 }
 0x507   :  { %1728 = vsyncpa [#allocation12], 1 }
 0x508   :  { %1729 = vsyncpa [#allocation4], 1 }
 0x509   :  { %1730 = vsyncpa [#allocation16], 1 }

</bundles_post_ra>
